<compile_context>
chip_gen: v6e
topology: v6e:2x2x1
jax: 0.10.0
libtpu: 0.0.40
codegen_flags: <defaults>
</compile_context>

<pallas_src>
import math

import jax
import jax.numpy as jnp
from jax.experimental import pallas as pl
from jax.experimental.pallas import tpu as pltpu

SQRT5 = math.sqrt(5.0)


def _matern52_kernel(c2_ref, a_ref, bt_ref, o_ref):
    # c2_ref: (1, 1) SMEM f32 -- c^2
    # a_ref:  (tm, d+2) f32   -- [-2*X1s, ||X1s||^2, 1]
    # bt_ref: (d+2, tn) f32   -- [X2s^T ; 1 ; ||X2s||^2]
    # o_ref:  (tm, tn)
    c2 = c2_ref[0, 0]

    # r2[i,j] = sq1[i] + sq2[j] - 2 * X1s[i].X2s[j]   -- straight off the MXU.
    r2 = jnp.dot(a_ref[...], bt_ref[...], preferred_element_type=jnp.float32)
    r2 = jnp.maximum(r2, 0.0)          # guard cancellation (exact diagonal)

    sr = jnp.sqrt(5.0 * r2)            # sqrt5 * r
    # (1 + sr + 5/3*r2) == (1 + sr + sr*sr/3); avoids a separate r/r2 temp.
    out = c2 * ((1.0 + sr) + sr * sr * (1.0 / 3.0)) * jnp.exp(-sr)
    o_ref[...] = out.astype(o_ref.dtype)


def matern52(X1, X2, c, l, *, tm=512, tn=1024, out_dtype=None):
    """Pallas forward of Matern52. X1:(n1,d), X2:(n2,d) -> (n1,n2)."""
    if X2 is None:
        X2 = X1
    n1, d = X1.shape
    n2 = X2.shape[0]
    out_dtype = X1.dtype if out_dtype is None else out_dtype

    # --- O(n*d) glue, all in f32 (protects the r^2 cancellation for bf16). ---
    inv_l = 1.0 / l.astype(jnp.float32)                                # (d,)
    X1s = X1.astype(jnp.float32) * inv_l                               # (n1, d)
    X2s = X2.astype(jnp.float32) * inv_l                               # (n2, d)
    sq1 = jnp.sum(X1s * X1s, axis=1, keepdims=True)                    # (n1, 1)
    sq2 = jnp.sum(X2s * X2s, axis=1, keepdims=True)                    # (n2, 1)

    ones1 = jnp.ones((n1, 1), jnp.float32)
    ones2 = jnp.ones((n2, 1), jnp.float32)
    # A @ B^T gives r2 directly (norm terms folded into the MXU contraction).
    A = jnp.concatenate([-2.0 * X1s, sq1, ones1], axis=1)              # (n1, d+2)
    Bt = jnp.transpose(jnp.concatenate([X2s, ones2, sq2], axis=1))     # (d+2, n2)

    c2 = jnp.reshape(jnp.asarray(c, jnp.float32) ** 2, (1, 1))         # (1, 1) f32

    k = d + 2

    # --- Tile selection: big lane-dense output tiles, bounded VMEM. ---
    def _need(tm_, tn_):  # double-buffered f32 tiles (out + A + B^T)
        return 2 * 4 * (tm_ * tn_ + tm_ * k + k * tn_)

    while tn > 256 and _need(tm, tn) > (24 << 20):   # shrink for very large d
        tn //= 2
    while tm > 256 and _need(tm, tn) > (24 << 20):
        tm //= 2

    # Clamp for small problems (full-extent blocks are always legal).
    tm = min(tm, n1)
    tn = min(tn, n2)

    # Explicit scoped-VMEM limit so larger tiles stay legal on v5e (16 MiB
    # default) without approaching v7x's 64 MiB physical VMEM.
    vmem_limit = int(min(2 * _need(tm, tn) + (8 << 20), 48 << 20))

    grid = (pl.cdiv(n1, tm), pl.cdiv(n2, tn))
    return pl.pallas_call(
        _matern52_kernel,
        out_shape=jax.ShapeDtypeStruct((n1, n2), out_dtype),
        grid_spec=pltpu.PrefetchScalarGridSpec(
            num_scalar_prefetch=0,
            grid=grid,
            in_specs=[
                pl.BlockSpec(memory_space=pltpu.MemorySpace.SMEM),     # c^2
                pl.BlockSpec((tm, k), lambda i, j: (i, 0)),            # A tile
                pl.BlockSpec((k, tn), lambda i, j: (0, j)),            # B^T tile
            ],
            out_specs=pl.BlockSpec((tm, tn), lambda i, j: (i, j)),
        ),
        compiler_params=pltpu.CompilerParams(
            dimension_semantics=("parallel", "parallel"),
            vmem_limit_bytes=vmem_limit),
    )(c2, A, Bt)


def _ref_forward(X1, X2, c, l):
    """Pure-JAX reference mirroring the PyTorch Matern52.forward."""
    if X2 is None:
        X2 = X1
    X1l = X1 / l
    X2l = X2 / l
    r = jnp.sqrt(jnp.sum((X1l[:, None, :] - X2l[None, :, :]) ** 2, axis=-1))
    return (c ** 2) * (1.0 + SQRT5 * r + (5.0 / 3.0) * r ** 2) * jnp.exp(-SQRT5 * r)


if __name__ == "__main__":
    # Small shapes: n1 = 32, n2 = 16 samples, d = 4 features.
    n1, n2, d = 32, 16, 4
    key = jax.random.PRNGKey(0)
    k1, k2 = jax.random.split(key)
    X1 = jax.random.normal(k1, (n1, d), dtype=jnp.float32)
    X2 = jax.random.normal(k2, (n2, d), dtype=jnp.float32)

    # The module stores log(scale)/log(length) and exposes c = exp(_c),
    # l = exp(_l); so we pass positive values directly.
    overall_scaling = jnp.array(1.5, dtype=jnp.float32)               # c
    character_length = jnp.array([0.7, 1.0, 1.3, 2.0], jnp.float32)   # l, (d,)

    # Cross-covariance (small tiles to exercise a multi-step grid).
    out = matern52(X1, X2, overall_scaling, character_length, tm=8, tn=16)
    out = jax.block_until_ready(out)
    ref = _ref_forward(X1, X2, overall_scaling, character_length)
    assert out.shape == (n1, n2)
    assert jnp.allclose(out, ref, rtol=1e-4, atol=1e-4), "mismatch vs reference"

    # Self-covariance path (X2=None): exercises r=0 diagonal + r2 clamp,
    # with default (clamped-to-full-extent) tiles.
    out_self = matern52(X1, None, overall_scaling, character_length)
    out_self = jax.block_until_ready(out_self)
    ref_self = _ref_forward(X1, None, overall_scaling, character_length)
    assert out_self.shape == (n1, n1)
    assert jnp.allclose(out_self, ref_self, rtol=1e-4, atol=1e-4), "self mismatch"

    print("KERNEL_OK")
</pallas_src>

<mosaic_0001>
module attributes {stable_mosaic.version = 11 : i64} {
  func.func @_matern52_kernel(%arg0: i32, %arg1: i32, %arg2: memref<1x1xf32, #tpu.memory_space<smem>>, %arg3: memref<8x6xf32, #tpu.memory_space<vmem>>, %arg4: memref<6x16xf32, #tpu.memory_space<vmem>>, %arg5: memref<8x16xf32, #tpu.memory_space<vmem>>) attributes {dimension_semantics = [#tpu.dimension_semantics<parallel>, #tpu.dimension_semantics<parallel>], iteration_bounds = array<i64: 4, 1>, scalar_prefetch = 0 : i64, scratch_operands = 0 : i64, tpu.core_type = #tpu.core_type<tc>, window_params = [{transform_indices = @transform_0, window_bounds = array<i64: 1, 1>}, {transform_indices = @transform_1, window_bounds = array<i64: 8, 6>}, {transform_indices = @transform_2, window_bounds = array<i64: 6, 16>}, {transform_indices = @transform_3, window_bounds = array<i64: 8, 16>}]} {
    %c0 = arith.constant 0 : index
    %c0_0 = arith.constant 0 : index
    %0 = memref.load %arg2[%c0, %c0_0] : memref<1x1xf32, #tpu.memory_space<smem>>
    %c0_1 = arith.constant 0 : index
    %c0_2 = arith.constant 0 : index
    %1 = vector.load %arg3[%c0_1, %c0_2] : memref<8x6xf32, #tpu.memory_space<vmem>>, vector<8x6xf32>
    %c0_3 = arith.constant 0 : index
    %c0_4 = arith.constant 0 : index
    %2 = vector.load %arg4[%c0_3, %c0_4] : memref<6x16xf32, #tpu.memory_space<vmem>>, vector<6x16xf32>
    %cst = arith.constant dense<0.000000e+00> : vector<8x16xf32>
    %3 = tpu.matmul %1, %2, %cst {dimension_numbers = #tpu.dot_dimension_numbers<[1], [0], [0], [1], [0, 0, 1, 1], [], []>} : vector<8x6xf32>, vector<6x16xf32>, vector<8x16xf32> -> vector<8x16xf32>
    %cst_5 = arith.constant 0.000000e+00 : f32
    %4 = vector.broadcast %cst_5 : f32 to vector<8x16xf32>
    %5 = arith.maximumf %3, %4 : vector<8x16xf32>
    %cst_6 = arith.constant 5.000000e+00 : f32
    %6 = vector.broadcast %cst_6 : f32 to vector<8x16xf32>
    %7 = arith.mulf %6, %5 : vector<8x16xf32>
    %8 = math.sqrt %7 : vector<8x16xf32>
    %cst_7 = arith.constant 1.000000e+00 : f32
    %9 = vector.broadcast %cst_7 : f32 to vector<8x16xf32>
    %10 = arith.addf %9, %8 : vector<8x16xf32>
    %11 = arith.mulf %8, %8 : vector<8x16xf32>
    %cst_8 = arith.constant 0.333333343 : f32
    %12 = vector.broadcast %cst_8 : f32 to vector<8x16xf32>
    %13 = arith.mulf %11, %12 : vector<8x16xf32>
    %14 = arith.addf %10, %13 : vector<8x16xf32>
    %15 = vector.broadcast %0 : f32 to vector<8x16xf32>
    %16 = arith.mulf %15, %14 : vector<8x16xf32>
    %cst_9 = arith.constant 0.000000e+00 : f32
    %17 = vector.broadcast %cst_9 : f32 to vector<8x16xf32>
    %18 = arith.subf %17, %8 : vector<8x16xf32>
    %19 = math.exp %18 : vector<8x16xf32>
    %20 = arith.mulf %16, %19 : vector<8x16xf32>
    %c0_10 = arith.constant 0 : index
    %c0_11 = arith.constant 0 : index
    %21 = vector.load %arg5[%c0_10, %c0_11] : memref<8x16xf32, #tpu.memory_space<vmem>>, vector<8x16xf32>
    tpu.vector_store %arg5[%c0_10, %c0_11], %20 {strides = array<i32>} : memref<8x16xf32, #tpu.memory_space<vmem>>, vector<8x16xf32>,
    return
  }
  func.func @transform_0(%arg0: i32, %arg1: i32) -> (i32, i32) {
    %c0_i32 = arith.constant 0 : i32
    %c0_i32_0 = arith.constant 0 : i32
    %c0_i32_1 = arith.constant 0 : i32
    return %c0_i32, %c0_i32_0 : i32, i32
  }
  func.func @transform_1(%arg0: i32, %arg1: i32) -> (i32, i32) {
    %c0_i32 = arith.constant 0 : i32
    %c0_i32_0 = arith.constant 0 : i32
    return %arg0, %c0_i32 : i32, i32
  }
  func.func @transform_2(%arg0: i32, %arg1: i32) -> (i32, i32) {
    %c0_i32 = arith.constant 0 : i32
    %c0_i32_0 = arith.constant 0 : i32
    return %c0_i32, %arg1 : i32, i32
  }
  func.func @transform_3(%arg0: i32, %arg1: i32) -> (i32, i32) {
    %c0_i32 = arith.constant 0 : i32
    return %arg0, %arg1 : i32, i32
  }
}

</mosaic_0001>

<bundles_post_ra>
// kernel: tpu_custom_call.1
= control target key start
LH: loop header
LB: loop body
LE: loop exit
PB: predicated region body
PF: predicated region fallthrough
CT: control target
= control target key end

     0   :  { %s491_s14 = smov 0   ;;  %s493_s15 = smov 0   ;;  %s530_s0 = inlined_call_operand.<no memory space> [shape: f32[1,1], index: 0, kind: input, shape index: {}]   ;;  %s531_s1 = inlined_call_operand.vmem [shape: f32[32,6], index: 1, kind: input, shape index: {}]   ;;  %s532_s2 = inlined_call_operand.vmem [shape: f32[6,16], index: 2, kind: input, shape index: {}]   ;;  %s533_s3 = inlined_call_operand.vmem [shape: f32[32,16], index: 3, kind: output, shape index: {}]  }
   0x1   :  { %8 = sst [smem:[#allocation2]] %s530_s0  ;;  %s495_s16 = smov 0  }
   0x2 LB: > { %s26_s0 = sadd.s32 1, %s460_s15  ;;  %p398_p0 = scmp.ge.s32.totalorder %s464_s16, 1  ;;  %s464_s16 = sphi %s495_s16, %s14_s16   ;;  %s460_s15 = sphi %s493_s15, %s535_s15   ;;  %s456_s14 = sphi %s491_s14, %s534_s14  }
   0x3   : > { %p28_p1 = scmp.ge.s32.totalorder %s26_s0, 4  ;;  %p160_p2 = scmp.lt.s32.totalorder %s464_s16, 5 }
   0x5   : > { %s537_s0 = smov (%p28_p1, %s26_s0), 0  ;;  %p161_p3 = pnand %p398_p0, %p160_p2 }
   0x6   : > { %p189_p4 = scmp.lt.s32.totalorder (!%p161_p3), %s456_s14, 3  ;;  %s204_s23 = sld [smem:[#allocation2]] (!%p161_p3) }
   0x7   : > { %164 = sbr.rel (%p161_p3) target bundleno = 252 (0xfc), region = 32 }
   0xc   : > { %v206_v0 = vld [vmem:[%s532_s2] sm:$0x3f]  ;;  %vm211_vm0 = vcmask 1045504   ;;  %v466_v1 = vmov 0.0   ;;  %vm467_vm1 = vmmov 0   ;;  %s539_s14 = smov (!%p189_p4, %s456_s14), 3  ;;  %v298_v18 = vstv %s204_s23 }
   0xd   : > { %407 = vmatprep.subr.mxu0 %v466_v1  ;;  %409 = vmatprep.mubr.msk.f32.mxu0 %vm467_vm1, %v466_v1  ;;  %s399_s19 = sshll.u32 %s539_s14, 3  ;;  %vm207_vm2 = vcmask 48128   ;;  %vm304_vm5 = vcmask 130048  }
   0xe   : > { %408 = vmatpush3.msk.msra.mxu0 %vm211_vm0, %v206_v0  ;;  %s192_s22 = scalar_lea.vmem %s531_s1, %s399_s19  ;;  %s203_s26 = scalar_lea.vmem %s533_s3, %s399_s19 }
   0xf   : > { %v205_v2 = vld [vmem:[%s192_s22] sm:$0xff] }
  0x10   : > { %410 = vmatmul.mubr.msk.f32.vlgmr.msra.gmra.mxu0 %vm207_vm2, %v205_v2 }
  0xd0   : > { %v281_v3 = vpop.f32.mrf.mxu0 }
  0xd1   : > { %v285_v4 = vmax.f32 %v281_v3, 0.0 }
  0xd2   : > { %v411_v5 = vpop.f32.mrf.mxu0 }
  0xd3   : > { %v286_v6 = vmul.f32 5.0, %v285_v4 }
  0xd5   : > { %438 = vrsqrt.f32 %v286_v6  ;;  %vm289_vm3 = vcmp.eq.f32.partialorder %v286_v6, inf  ;;  %v292_v9 = vand.u32 2147483648, %v286_v6  ;;  %vm291_vm4 = vcmp.eq.f32.partialorder %v286_v6, 0.0 }
  0xe2   : > { %v439_v7 = vpop.eup %438 }
  0xe3   : > { %v288_v8 = vmul.f32 %v439_v7, %v286_v6 }
  0xe5   : > { %v290_v10 = vsel %vm289_vm3, %v286_v6, %v288_v8 }
  0xe6   : > { %v293_v11 = vsel %vm291_vm4, %v292_v9, %v290_v10 }
  0xe7   : > { %v300_v12 = vsub.f32 0.0, %v293_v11  ;;  %v295_v14 = vmul.f32 %v293_v11, %v293_v11  ;;  %v294_v16 = vadd.f32 1.0, %v293_v11 }
  0xe9   : > { %v301_v13 = vmul.f32 1.442695, %v300_v12  ;;  %v296_v15 = vmul.f32 0.33333334, %v295_v14 }
  0xeb   : > { %440 = vpow2.f32 %v301_v13  ;;  %v297_v17 = vadd.f32 %v296_v15, %v294_v16 }
  0xed   : > { %v299_v19 = vmul.f32 %v298_v18, %v297_v17 }
  0xf8   : > { %v441_v20 = vpop.eup %440 }
  0xf9   : > { %v303_v21 = vmul.f32 %v441_v20, %v299_v19 }
  0xfb   : > { %305 = vst.msk [vmem:[%s203_s26] sm:$0xff] %vm304_vm5, %v303_v21 }
  0xfc PF: > { %s14_s16 = sadd.s32 1, %s464_s16   ;;  %s534_s14 = smov %s460_s15 }
  0xfd   : > { %p11_p5 = scmp.ge.s32.totalorder %s14_s16, 6   ;;  %s535_s15 = smov %s537_s0 }
  0xff   :  { %13 = sbr.rel (!%p11_p5) target bundleno = 2 (0x2), region = 65 }

</bundles_post_ra>
